<compile_context>
chip_gen: v6e
topology: v6e:2x2x1
jax: 0.10.0
libtpu: 0.0.40
codegen_flags: <defaults>
</compile_context>

<pallas_src>
import functools
import math

import jax
import jax.numpy as jnp
import numpy as np
from jax.experimental import pallas as pl
from jax.experimental.pallas import tpu as pltpu


def _mixture_kernel(nu2_ref, oscs_ref, gnu_ref, epsinf_ref, abund_ref,
                    wn_ref, spectra_ref, pred_ref, *, num_osc):
    """Emissivity spectra for all endmembers at once + abundance-weighted mix.

    nu2/oscs/gnu: (E, J) VMEM    (nu_j^2, 4*pi*rho_j*nu_j^2, gamma_j*nu_j)
    epsinf/abund: (E, 1) VMEM
    wn_ref:       (1, Wt) VMEM tile of wavenumbers.
    spectra_ref:  (E, Wt) VMEM output tile.   pred_ref: (1, Wt) VMEM output tile.
    """
    E, Wt = spectra_ref.shape

    # Hoisted broadcasts (JAX does not CSE broadcast_in_dim inside loops).
    wn = jnp.broadcast_to(wn_ref[...], (E, Wt))          # (E, Wt)
    wn2 = wn * wn

    nu2_all = nu2_ref[...]                               # (E, J)
    oscs_all = oscs_ref[...]
    gnu_all = gnu_ref[...]

    eps_r = jnp.broadcast_to(epsinf_ref[...], (E, Wt))   # (E, Wt)
    eps_i = jnp.zeros((E, Wt), jnp.float32)

    # complex dielectric: eps(nu) = eps_inf + sum_j 4*pi*rho_j*nu_j^2 /
    #                               (nu_j^2 - nu^2 - i*gamma_j*nu_j*nu)
    for j in range(num_osc):
        nu2 = nu2_all[:, j:j + 1]        # (E, 1) -> lane-broadcast
        s = oscs_all[:, j:j + 1]         # 4*pi*rho*nu^2
        gnu = gnu_all[:, j:j + 1]        # gamma*nu
        dr = nu2 - wn2                   # (E, Wt)
        di = gnu * wn                    # (E, Wt)
        den = dr * dr + di * di
        inv = pl.reciprocal(den, approx=True)
        inv = inv * (2.0 - den * inv)    # one Newton-Raphson refinement
        eps_r = eps_r + s * dr * inv
        eps_i = eps_i + s * di * inv

    # complex refractive index n + i k = sqrt(eps);  |eps| = n^2 + k^2
    mag = jnp.sqrt(eps_r * eps_r + eps_i * eps_i)
    n = jnp.sqrt(jnp.maximum((mag + eps_r) * 0.5, 0.0))

    # normal-incidence Fresnel reflectance -> emissivity (Kirchhoff), using
    # ((n-1)^2 + k^2)/((n+1)^2 + k^2) == (mag + 1 - 2n)/(mag + 1 + 2n)
    denom = mag + 1.0 + 2.0 * n
    inv_d = pl.reciprocal(denom, approx=True)
    inv_d = inv_d * (2.0 - denom * inv_d)
    emis = 1.0 - (mag + 1.0 - 2.0 * n) * inv_d           # (E, Wt)

    spectra_ref[...] = emis
    # abundance mix: VPU mul + XLU sublane reduce (intentionally NOT the MXU)
    pred_ref[...] = jnp.sum(abund_ref[...] * emis, axis=0, keepdims=True)


def _pick_tile_w(W):
    """Whole problem in one step when small; 512-2048 tiles (>=2 blocks) when large."""
    if W <= 1024:
        return W
    for t in (2048, 1024, 512, 256, 128):
        if W % t == 0 and W // t >= 2:
            return t
    return W


def inverse_render_mixture(wavenumbers, freqs, gammas, rhos, eps_inf, abundances,
                           *, tile_w=None):
    """Returns (endmemberSpectra, predictedSpectra) matching the torch module.

    endmemberSpectra: (W, 1, E)  (== torch.stack([model().t() ...], dim=2), batch=1)
    predictedSpectra: (W,)
    """
    W = wavenumbers.shape[0]
    E, J = freqs.shape
    if tile_w is None:
        tile_w = _pick_tile_w(W)
    assert W % tile_w == 0, "wavenumber count must be divisible by tile_w"

    f32 = jnp.float32
    wn2d = wavenumbers.reshape(1, W).astype(f32)
    # per-oscillator constants precomputed once (outside the grid loop)
    nu2 = (freqs * freqs).astype(f32)                              # nu_j^2
    oscs = ((4.0 * math.pi) * rhos * freqs * freqs).astype(f32)    # 4*pi*rho*nu^2
    gnu = (gammas * freqs).astype(f32)                             # gamma*nu
    epsinf_col = eps_inf.reshape(E, 1).astype(f32)
    abund_col = abundances.reshape(E, 1).astype(f32)

    kernel = functools.partial(_mixture_kernel, num_osc=J)

    param_ej = pl.BlockSpec((E, J), lambda i: (0, 0))
    param_e1 = pl.BlockSpec((E, 1), lambda i: (0, 0))

    cost = pl.CostEstimate(
        flops=int(W * E * (10 * J + 25)),
        transcendentals=int(W * E * (J + 2)),
        bytes_accessed=int((E + 2) * W * 4),
    )

    spectra_ew, pred = pl.pallas_call(
        kernel,
        out_shape=(
            jax.ShapeDtypeStruct((E, W), f32),
            jax.ShapeDtypeStruct((1, W), f32),
        ),
        grid=(W // tile_w,),
        in_specs=[
            param_ej,                                      # nu_j^2          (E, J)
            param_ej,                                      # 4*pi*rho*nu^2   (E, J)
            param_ej,                                      # gamma*nu        (E, J)
            param_e1,                                      # eps_inf         (E, 1)
            param_e1,                                      # abundances      (E, 1)
            pl.BlockSpec((1, tile_w), lambda i: (0, i)),   # wavenumbers
        ],
        out_specs=[
            pl.BlockSpec((E, tile_w), lambda i: (0, i)),   # endmember spectra (E, W)
            pl.BlockSpec((1, tile_w), lambda i: (0, i)),   # predicted spectra (1, W)
        ],
        compiler_params=pltpu.CompilerParams(dimension_semantics=("parallel",)),
        cost_estimate=cost,
    )(nu2, oscs, gnu, epsinf_col, abund_col, wn2d)

    endmember_spectra = spectra_ew.T.reshape(W, 1, E)
    predicted_spectra = pred.reshape(W)
    return endmember_spectra, predicted_spectra


def _reference(wavenumbers, freqs, gammas, rhos, eps_inf, abundances):
    """Plain-JAX reference of the same forward pass (for correctness check)."""
    wn = wavenumbers[None, None, :]                       # (1, 1, W)
    nu = freqs[:, :, None]
    gam = gammas[:, :, None]
    rho = rhos[:, :, None]
    num = 4.0 * math.pi * rho * nu * nu
    dr = nu * nu - wn * wn
    di = gam * nu * wn
    den = dr * dr + di * di
    eps_r = eps_inf[:, None] + jnp.sum(num * dr / den, axis=1)   # (E, W)
    eps_i = jnp.sum(num * di / den, axis=1)
    mag = jnp.sqrt(eps_r * eps_r + eps_i * eps_i)
    n = jnp.sqrt(jnp.maximum((mag + eps_r) * 0.5, 0.0))
    k = jnp.sqrt(jnp.maximum((mag - eps_r) * 0.5, 0.0))
    emis = 1.0 - ((n - 1.0) ** 2 + k * k) / ((n + 1.0) ** 2 + k * k)  # (E, W)
    pred = emis.T @ abundances                                        # (W,)
    return emis, pred


if __name__ == "__main__":
    # small, TPU-friendly shapes: W wavenumbers, E endmembers, J oscillators each
    W, E, J = 256, 8, 4

    key = jax.random.PRNGKey(0)
    k1, k2, k3, k4, k5 = jax.random.split(key, 5)

    wavenumbers = jnp.linspace(400.0, 1400.0, W, dtype=jnp.float32)
    freqs = jax.random.uniform(k1, (E, J), jnp.float32, minval=500.0, maxval=1300.0)
    gammas = jax.random.uniform(k2, (E, J), jnp.float32, minval=0.02, maxval=0.08)
    rhos = jax.random.uniform(k3, (E, J), jnp.float32, minval=0.05, maxval=0.5)
    eps_inf = jax.random.uniform(k4, (E,), jnp.float32, minval=1.8, maxval=2.6)
    ab_raw = jax.random.uniform(k5, (E,), jnp.float32, minval=0.1, maxval=1.0)
    abundances = ab_raw / jnp.sum(ab_raw)

    endmember_spectra, predicted = inverse_render_mixture(
        wavenumbers, freqs, gammas, rhos, eps_inf, abundances)
    jax.block_until_ready(predicted)

    # correctness check against plain-JAX reference
    ref_emis, ref_pred = _reference(wavenumbers, freqs, gammas, rhos, eps_inf, abundances)
    np.testing.assert_allclose(
        np.asarray(endmember_spectra).reshape(W, E),
        np.asarray(ref_emis).T, rtol=2e-4, atol=2e-5)
    np.testing.assert_allclose(
        np.asarray(predicted), np.asarray(ref_pred), rtol=2e-4, atol=2e-5)

    print("KERNEL_OK")
</pallas_src>

<mosaic_0001>
module attributes {stable_mosaic.version = 11 : i64} {
  func.func @_mixture_kernel(%arg0: i32, %arg1: memref<8x4xf32, #tpu.memory_space<vmem>>, %arg2: memref<8x4xf32, #tpu.memory_space<vmem>>, %arg3: memref<8x4xf32, #tpu.memory_space<vmem>>, %arg4: memref<8x1xf32, #tpu.memory_space<vmem>>, %arg5: memref<8x1xf32, #tpu.memory_space<vmem>>, %arg6: memref<1x256xf32, #tpu.memory_space<vmem>>, %arg7: memref<8x256xf32, #tpu.memory_space<vmem>>, %arg8: memref<1x256xf32, #tpu.memory_space<vmem>>) attributes {dimension_semantics = [#tpu.dimension_semantics<parallel>], iteration_bounds = array<i64: 1>, scalar_prefetch = 0 : i64, scratch_operands = 0 : i64, tpu.core_type = #tpu.core_type<tc>, window_params = [{pipeline_mode = #tpu.pipeline_mode<synchronous>, transform_indices = @transform_0, window_bounds = array<i64: 8, 4>}, {pipeline_mode = #tpu.pipeline_mode<synchronous>, transform_indices = @transform_1, window_bounds = array<i64: 8, 4>}, {pipeline_mode = #tpu.pipeline_mode<synchronous>, transform_indices = @transform_2, window_bounds = array<i64: 8, 4>}, {pipeline_mode = #tpu.pipeline_mode<synchronous>, transform_indices = @transform_3, window_bounds = array<i64: 8, 1>}, {pipeline_mode = #tpu.pipeline_mode<synchronous>, transform_indices = @transform_4, window_bounds = array<i64: 8, 1>}, {transform_indices = @transform_5, window_bounds = array<i64: 1, 256>}, {transform_indices = @transform_6, window_bounds = array<i64: 8, 256>}, {transform_indices = @transform_7, window_bounds = array<i64: 1, 256>}]} {
    %c0 = arith.constant 0 : index
    %c0_0 = arith.constant 0 : index
    %0 = vector.load %arg6[%c0, %c0_0] : memref<1x256xf32, #tpu.memory_space<vmem>>, vector<1x256xf32>
    %1 = vector.shape_cast %0 : vector<1x256xf32> to vector<1x256xf32>
    %2 = vector.broadcast %1 : vector<1x256xf32> to vector<8x256xf32>
    %3 = arith.mulf %2, %2 : vector<8x256xf32>
    %c0_1 = arith.constant 0 : index
    %c0_2 = arith.constant 0 : index
    %4 = vector.load %arg1[%c0_1, %c0_2] : memref<8x4xf32, #tpu.memory_space<vmem>>, vector<8x4xf32>
    %c0_3 = arith.constant 0 : index
    %c0_4 = arith.constant 0 : index
    %5 = vector.load %arg2[%c0_3, %c0_4] : memref<8x4xf32, #tpu.memory_space<vmem>>, vector<8x4xf32>
    %c0_5 = arith.constant 0 : index
    %c0_6 = arith.constant 0 : index
    %6 = vector.load %arg3[%c0_5, %c0_6] : memref<8x4xf32, #tpu.memory_space<vmem>>, vector<8x4xf32>
    %c0_7 = arith.constant 0 : index
    %c0_8 = arith.constant 0 : index
    %7 = vector.load %arg4[%c0_7, %c0_8] : memref<8x1xf32, #tpu.memory_space<vmem>>, vector<8x1xf32>
    %8 = vector.shape_cast %7 : vector<8x1xf32> to vector<8x1xf32>
    %9 = vector.broadcast %8 : vector<8x1xf32> to vector<8x256xf32>
    %cst = arith.constant 0.000000e+00 : f32
    %10 = vector.broadcast %cst : f32 to vector<8x256xf32>
    %11 = vector.extract_strided_slice %4 {offsets = [0, 0], sizes = [8, 1], strides = [1, 1]} : vector<8x4xf32> to vector<8x1xf32>
    %12 = vector.extract_strided_slice %5 {offsets = [0, 0], sizes = [8, 1], strides = [1, 1]} : vector<8x4xf32> to vector<8x1xf32>
    %13 = vector.extract_strided_slice %6 {offsets = [0, 0], sizes = [8, 1], strides = [1, 1]} : vector<8x4xf32> to vector<8x1xf32>
    %14 = vector.broadcast %11 : vector<8x1xf32> to vector<8x256xf32>
    %15 = arith.subf %14, %3 : vector<8x256xf32>
    %16 = vector.broadcast %13 : vector<8x1xf32> to vector<8x256xf32>
    %17 = arith.mulf %16, %2 : vector<8x256xf32>
    %18 = arith.mulf %15, %15 : vector<8x256xf32>
    %19 = arith.mulf %17, %17 : vector<8x256xf32>
    %20 = arith.addf %18, %19 : vector<8x256xf32>
    %21 = tpu.reciprocal %20 {approx = true} : vector<8x256xf32> -> vector<8x256xf32>
    %22 = arith.mulf %20, %21 : vector<8x256xf32>
    %cst_9 = arith.constant 2.000000e+00 : f32
    %23 = vector.broadcast %cst_9 : f32 to vector<8x256xf32>
    %24 = arith.subf %23, %22 : vector<8x256xf32>
    %25 = arith.mulf %21, %24 : vector<8x256xf32>
    %26 = vector.broadcast %12 : vector<8x1xf32> to vector<8x256xf32>
    %27 = arith.mulf %26, %15 : vector<8x256xf32>
    %28 = arith.mulf %27, %25 : vector<8x256xf32>
    %29 = arith.addf %9, %28 : vector<8x256xf32>
    %30 = vector.broadcast %12 : vector<8x1xf32> to vector<8x256xf32>
    %31 = arith.mulf %30, %17 : vector<8x256xf32>
    %32 = arith.mulf %31, %25 : vector<8x256xf32>
    %33 = arith.addf %10, %32 : vector<8x256xf32>
    %34 = vector.extract_strided_slice %4 {offsets = [0, 1], sizes = [8, 1], strides = [1, 1]} : vector<8x4xf32> to vector<8x1xf32>
    %35 = vector.extract_strided_slice %5 {offsets = [0, 1], sizes = [8, 1], strides = [1, 1]} : vector<8x4xf32> to vector<8x1xf32>
    %36 = vector.extract_strided_slice %6 {offsets = [0, 1], sizes = [8, 1], strides = [1, 1]} : vector<8x4xf32> to vector<8x1xf32>
    %37 = vector.broadcast %34 : vector<8x1xf32> to vector<8x256xf32>
    %38 = arith.subf %37, %3 : vector<8x256xf32>
    %39 = vector.broadcast %36 : vector<8x1xf32> to vector<8x256xf32>
    %40 = arith.mulf %39, %2 : vector<8x256xf32>
    %41 = arith.mulf %38, %38 : vector<8x256xf32>
    %42 = arith.mulf %40, %40 : vector<8x256xf32>
    %43 = arith.addf %41, %42 : vector<8x256xf32>
    %44 = tpu.reciprocal %43 {approx = true} : vector<8x256xf32> -> vector<8x256xf32>
    %45 = arith.mulf %43, %44 : vector<8x256xf32>
    %cst_10 = arith.constant 2.000000e+00 : f32
    %46 = vector.broadcast %cst_10 : f32 to vector<8x256xf32>
    %47 = arith.subf %46, %45 : vector<8x256xf32>
    %48 = arith.mulf %44, %47 : vector<8x256xf32>
    %49 = vector.broadcast %35 : vector<8x1xf32> to vector<8x256xf32>
    %50 = arith.mulf %49, %38 : vector<8x256xf32>
    %51 = arith.mulf %50, %48 : vector<8x256xf32>
    %52 = arith.addf %29, %51 : vector<8x256xf32>
    %53 = vector.broadcast %35 : vector<8x1xf32> to vector<8x256xf32>
    %54 = arith.mulf %53, %40 : vector<8x256xf32>
    %55 = arith.mulf %54, %48 : vector<8x256xf32>
    %56 = arith.addf %33, %55 : vector<8x256xf32>
    %57 = vector.extract_strided_slice %4 {offsets = [0, 2], sizes = [8, 1], strides = [1, 1]} : vector<8x4xf32> to vector<8x1xf32>
    %58 = vector.extract_strided_slice %5 {offsets = [0, 2], sizes = [8, 1], strides = [1, 1]} : vector<8x4xf32> to vector<8x1xf32>
    %59 = vector.extract_strided_slice %6 {offsets = [0, 2], sizes = [8, 1], strides = [1, 1]} : vector<8x4xf32> to vector<8x1xf32>
    %60 = vector.broadcast %57 : vector<8x1xf32> to vector<8x256xf32>
    %61 = arith.subf %60, %3 : vector<8x256xf32>
    %62 = vector.broadcast %59 : vector<8x1xf32> to vector<8x256xf32>
    %63 = arith.mulf %62, %2 : vector<8x256xf32>
    %64 = arith.mulf %61, %61 : vector<8x256xf32>
    %65 = arith.mulf %63, %63 : vector<8x256xf32>
    %66 = arith.addf %64, %65 : vector<8x256xf32>
    %67 = tpu.reciprocal %66 {approx = true} : vector<8x256xf32> -> vector<8x256xf32>
    %68 = arith.mulf %66, %67 : vector<8x256xf32>
    %cst_11 = arith.constant 2.000000e+00 : f32
    %69 = vector.broadcast %cst_11 : f32 to vector<8x256xf32>
    %70 = arith.subf %69, %68 : vector<8x256xf32>
    %71 = arith.mulf %67, %70 : vector<8x256xf32>
    %72 = vector.broadcast %58 : vector<8x1xf32> to vector<8x256xf32>
    %73 = arith.mulf %72, %61 : vector<8x256xf32>
    %74 = arith.mulf %73, %71 : vector<8x256xf32>
    %75 = arith.addf %52, %74 : vector<8x256xf32>
    %76 = vector.broadcast %58 : vector<8x1xf32> to vector<8x256xf32>
    %77 = arith.mulf %76, %63 : vector<8x256xf32>
    %78 = arith.mulf %77, %71 : vector<8x256xf32>
    %79 = arith.addf %56, %78 : vector<8x256xf32>
    %80 = vector.extract_strided_slice %4 {offsets = [0, 3], sizes = [8, 1], strides = [1, 1]} : vector<8x4xf32> to vector<8x1xf32>
    %81 = vector.extract_strided_slice %5 {offsets = [0, 3], sizes = [8, 1], strides = [1, 1]} : vector<8x4xf32> to vector<8x1xf32>
    %82 = vector.extract_strided_slice %6 {offsets = [0, 3], sizes = [8, 1], strides = [1, 1]} : vector<8x4xf32> to vector<8x1xf32>
    %83 = vector.broadcast %80 : vector<8x1xf32> to vector<8x256xf32>
    %84 = arith.subf %83, %3 : vector<8x256xf32>
    %85 = vector.broadcast %82 : vector<8x1xf32> to vector<8x256xf32>
    %86 = arith.mulf %85, %2 : vector<8x256xf32>
    %87 = arith.mulf %84, %84 : vector<8x256xf32>
    %88 = arith.mulf %86, %86 : vector<8x256xf32>
    %89 = arith.addf %87, %88 : vector<8x256xf32>
    %90 = tpu.reciprocal %89 {approx = true} : vector<8x256xf32> -> vector<8x256xf32>
    %91 = arith.mulf %89, %90 : vector<8x256xf32>
    %cst_12 = arith.constant 2.000000e+00 : f32
    %92 = vector.broadcast %cst_12 : f32 to vector<8x256xf32>
    %93 = arith.subf %92, %91 : vector<8x256xf32>
    %94 = arith.mulf %90, %93 : vector<8x256xf32>
    %95 = vector.broadcast %81 : vector<8x1xf32> to vector<8x256xf32>
    %96 = arith.mulf %95, %84 : vector<8x256xf32>
    %97 = arith.mulf %96, %94 : vector<8x256xf32>
    %98 = arith.addf %75, %97 : vector<8x256xf32>
    %99 = vector.broadcast %81 : vector<8x1xf32> to vector<8x256xf32>
    %100 = arith.mulf %99, %86 : vector<8x256xf32>
    %101 = arith.mulf %100, %94 : vector<8x256xf32>
    %102 = arith.addf %79, %101 : vector<8x256xf32>
    %103 = arith.mulf %98, %98 : vector<8x256xf32>
    %104 = arith.mulf %102, %102 : vector<8x256xf32>
    %105 = arith.addf %103, %104 : vector<8x256xf32>
    %106 = math.sqrt %105 : vector<8x256xf32>
    %107 = arith.addf %106, %98 : vector<8x256xf32>
    %cst_13 = arith.constant 5.000000e-01 : f32
    %108 = vector.broadcast %cst_13 : f32 to vector<8x256xf32>
    %109 = arith.mulf %107, %108 : vector<8x256xf32>
    %cst_14 = arith.constant 0.000000e+00 : f32
    %110 = vector.broadcast %cst_14 : f32 to vector<8x256xf32>
    %111 = arith.maximumf %109, %110 : vector<8x256xf32>
    %112 = math.sqrt %111 : vector<8x256xf32>
    %cst_15 = arith.constant 1.000000e+00 : f32
    %113 = vector.broadcast %cst_15 : f32 to vector<8x256xf32>
    %114 = arith.addf %106, %113 : vector<8x256xf32>
    %cst_16 = arith.constant 2.000000e+00 : f32
    %115 = vector.broadcast %cst_16 : f32 to vector<8x256xf32>
    %116 = arith.mulf %115, %112 : vector<8x256xf32>
    %117 = arith.addf %114, %116 : vector<8x256xf32>
    %118 = tpu.reciprocal %117 {approx = true} : vector<8x256xf32> -> vector<8x256xf32>
    %119 = arith.mulf %117, %118 : vector<8x256xf32>
    %cst_17 = arith.constant 2.000000e+00 : f32
    %120 = vector.broadcast %cst_17 : f32 to vector<8x256xf32>
    %121 = arith.subf %120, %119 : vector<8x256xf32>
    %122 = arith.mulf %118, %121 : vector<8x256xf32>
    %cst_18 = arith.constant 1.000000e+00 : f32
    %123 = vector.broadcast %cst_18 : f32 to vector<8x256xf32>
    %124 = arith.addf %106, %123 : vector<8x256xf32>
    %cst_19 = arith.constant 2.000000e+00 : f32
    %125 = vector.broadcast %cst_19 : f32 to vector<8x256xf32>
    %126 = arith.mulf %125, %112 : vector<8x256xf32>
    %127 = arith.subf %124, %126 : vector<8x256xf32>
    %128 = arith.mulf %127, %122 : vector<8x256xf32>
    %cst_20 = arith.constant 1.000000e+00 : f32
    %129 = vector.broadcast %cst_20 : f32 to vector<8x256xf32>
    %130 = arith.subf %129, %128 : vector<8x256xf32>
    %c0_21 = arith.constant 0 : index
    %c0_22 = arith.constant 0 : index
    %131 = vector.load %arg7[%c0_21, %c0_22] : memref<8x256xf32, #tpu.memory_space<vmem>>, vector<8x256xf32>
    tpu.vector_store %arg7[%c0_21, %c0_22], %130 {strides = array<i32>} : memref<8x256xf32, #tpu.memory_space<vmem>>, vector<8x256xf32>,
    %c0_23 = arith.constant 0 : index
    %c0_24 = arith.constant 0 : index
    %132 = vector.load %arg5[%c0_23, %c0_24] : memref<8x1xf32, #tpu.memory_space<vmem>>, vector<8x1xf32>
    %133 = vector.broadcast %132 : vector<8x1xf32> to vector<8x256xf32>
    %134 = arith.mulf %133, %130 : vector<8x256xf32>
    %cst_25 = arith.constant dense<0.000000e+00> : vector<256xf32>
    %135 = vector.multi_reduction <add>, %134, %cst_25 [0] : vector<8x256xf32> to vector<256xf32>
    %136 = vector.shape_cast %135 : vector<256xf32> to vector<1x256xf32>
    %c0_26 = arith.constant 0 : index
    %c0_27 = arith.constant 0 : index
    %137 = vector.load %arg8[%c0_26, %c0_27] : memref<1x256xf32, #tpu.memory_space<vmem>>, vector<1x256xf32>
    tpu.vector_store %arg8[%c0_26, %c0_27], %136 {strides = array<i32>} : memref<1x256xf32, #tpu.memory_space<vmem>>, vector<1x256xf32>,
    return
  }
  func.func @transform_0(%arg0: i32) -> (i32, i32) {
    %c0_i32 = arith.constant 0 : i32
    %c0_i32_0 = arith.constant 0 : i32
    %c0_i32_1 = arith.constant 0 : i32
    return %c0_i32, %c0_i32_0 : i32, i32
  }
  func.func @transform_1(%arg0: i32) -> (i32, i32) {
    %c0_i32 = arith.constant 0 : i32
    %c0_i32_0 = arith.constant 0 : i32
    %c0_i32_1 = arith.constant 0 : i32
    return %c0_i32, %c0_i32_0 : i32, i32
  }
  func.func @transform_2(%arg0: i32) -> (i32, i32) {
    %c0_i32 = arith.constant 0 : i32
    %c0_i32_0 = arith.constant 0 : i32
    %c0_i32_1 = arith.constant 0 : i32
    return %c0_i32, %c0_i32_0 : i32, i32
  }
  func.func @transform_3(%arg0: i32) -> (i32, i32) {
    %c0_i32 = arith.constant 0 : i32
    %c0_i32_0 = arith.constant 0 : i32
    %c0_i32_1 = arith.constant 0 : i32
    return %c0_i32, %c0_i32_0 : i32, i32
  }
  func.func @transform_4(%arg0: i32) -> (i32, i32) {
    %c0_i32 = arith.constant 0 : i32
    %c0_i32_0 = arith.constant 0 : i32
    %c0_i32_1 = arith.constant 0 : i32
    return %c0_i32, %c0_i32_0 : i32, i32
  }
  func.func @transform_5(%arg0: i32) -> (i32, i32) {
    %c0_i32 = arith.constant 0 : i32
    %c0_i32_0 = arith.constant 0 : i32
    return %c0_i32, %arg0 : i32, i32
  }
  func.func @transform_6(%arg0: i32) -> (i32, i32) {
    %c0_i32 = arith.constant 0 : i32
    %c0_i32_0 = arith.constant 0 : i32
    return %c0_i32, %arg0 : i32, i32
  }
  func.func @transform_7(%arg0: i32) -> (i32, i32) {
    %c0_i32 = arith.constant 0 : i32
    %c0_i32_0 = arith.constant 0 : i32
    return %c0_i32, %arg0 : i32, i32
  }
}

</mosaic_0001>

<bundles_post_ra>
// kernel: tpu_custom_call.1
= control target key start
LH: loop header
LB: loop body
LE: loop exit
PB: predicated region body
PF: predicated region fallthrough
CT: control target
= control target key end

     0   :  { %13 = vsyncpa [#allocation3], 0  ;;  %v444_v1 = vmov 1   ;;  %v445_v2 = vmov 0   ;;  %s582_s0 = inlined_call_operand.vmem [shape: f32[8,4], index: 0, kind: input, shape index: {}]   ;;  %s583_s1 = inlined_call_operand.vmem [shape: f32[8,4], index: 1, kind: input, shape index: {}]   ;;  %s584_s2 = inlined_call_operand.vmem [shape: f32[8,4], index: 2, kind: input, shape index: {}]   ;;  %s585_s3 = inlined_call_operand.vmem [shape: f32[8,1], index: 3, kind: input, shape index: {}]   ;;  %s586_s4 = inlined_call_operand.vmem [shape: f32[8,1], index: 4, kind: input, shape index: {}]   ;;  %s587_s5 = inlined_call_operand.vmem [shape: f32[1,256], index: 5, kind: input, shape index: {}]   ;;  %s588_s6 = inlined_call_operand.hbm [shape: f32[8,256], index: 6, kind: output, shape index: {0}]   ;;  %s589_s7 = inlined_call_operand.hbm [shape: f32[1,256], index: 7, kind: output, shape index: {1}]  }
   0x1   :  { %v41_v0 = vld [vmem:[%s582_s0] sm:$0xff]  ;;  %362 = vset.pattern.permute.xlu1 %v444_v1  ;;  %361 = vset.pattern.permute.xlu0 %v445_v2 }
   0x2   :  { %96 = vperm.xlu1 %362, %v41_v0   ;;  %52 = vperm.xlu0 %361, %v41_v0  }
   0x3   :  { %14 = vsyncpa [#allocation5], 0  ;;  %v43_v3 = vld [vmem:[%s584_s2] sm:$0xff]  ;;  %v446_v4 = vmov 2   ;;  %v447_v5 = vmov 3   ;;  %v29_v9 = vlaneseq }
   0x4   :  { %v42_v6 = vld [vmem:[%s583_s1] sm:$0xff] }
   0x5   :  { %v44_v7 = vld [vmem:[%s585_s3] sm:$0xff]  ;;  %v507_v10 = vshrl.u32 %v29_v9, 7 }
   0x6   :  { %102 = vperm.xlu1 %362, %v43_v3   ;;  %59 = vperm.xlu0 %361, %v43_v3   ;;  %v283_v8 = vld [vmem:[%s586_s4] sm:$0xff]  ;;  %s448_s4 = smov [#allocation2]  }
   0x7   :  { %v31_v11 = vsub.s32 0, %v507_v10  ;;  %v35_v12 = vsub.s32 1, %v507_v10  ;;  %v27_v13 = vld [vmem:[%s587_s5] sm:$0x3]  ;;  %s332_s5 = sshll.u32 %s448_s4, 4  ;;  %s333_s5 = int_to_ptr.vmem [resolvable:$true] %s332_s5 }
   0x8   :  { %s400_s9 = scalar_lea.vmem %s333_s5, 256  ;;  %p405_p1 = scmp.lt.s32.totalorder %s333_s5, %s333_s5 }
   0x9   :  { %v32_v14 = vrot.slane %v27_v13, %v31_v11  ;;  %v36_v15 = vrot.slane %v27_v13, %v35_v12  ;;  %p401_p0 = scmp.ne.s32.totalorder %s333_s5, %s400_s9  ;;  %p406_p2 = scmp.lt.s32.totalorder %s400_s9, %s400_s9 }
   0xa   :  { %364 = vset.pattern.permute.xlu1 %v446_v4  ;;  %363 = vset.pattern.permute.xlu0 %v446_v4 }
   0xb   :  { %144 = vperm.xlu1 %364, %v43_v3   ;;  %138 = vperm.xlu0 %363, %v41_v0   ;;  %v39_v16 = vmul.f32 %v32_v14, %v32_v14  ;;  %v40_v17 = vmul.f32 %v36_v15, %v36_v15  ;;  %p407_p3 = por %p406_p2, %p405_p1 }
   0xd   :  { %p408_p4 = pnand %p407_p3, %p401_p0 }
   0xf   :  { %365 = vset.pattern.permute.xlu1 %v447_v5  ;;  %366 = vset.pattern.permute.xlu0 %v447_v5 }
  0x10   :  { %180 = vperm.xlu1 %365, %v41_v0   ;;  %186 = vperm.xlu0 %366, %v43_v3  }
  0x14   :  { %367 = vset.pattern.permute.xlu1 %v445_v2  ;;  %369 = vset.pattern.permute.xlu0 %v445_v2 }
  0x15   :  { %80 = vperm.xlu1 %367, %v42_v6   ;;  %47 = vperm.xlu0 %369, %v44_v7  }
  0x19   :  { %368 = vset.pattern.permute.xlu1 %v444_v1  ;;  %286 = vperm.xlu0 %369, %v283_v8  }
  0x1a   :  { %122 = vperm.xlu1 %368, %v42_v6  }
  0x1e   :  { %370 = vset.pattern.permute.xlu1 %v446_v4 }
  0x1f   :  { %164 = vperm.xlu1 %370, %v42_v6  }
  0x23   :  { %371 = vset.pattern.permute.xlu1 %v447_v5 }
  0x24   :  { %206 = vperm.xlu1 %371, %v42_v6  }
  0x7d   :  { %v97_v18 = vpop.permute.xlu1 %96  ;;  %v53_v19 = vpop.permute.xlu0 %52 }
  0x7e   :  { %v514_v20 = vsub.f32 %v97_v18, %v39_v16  ;;  %v516_v21 = vsub.f32 %v97_v18, %v40_v17  ;;  %v518_v22 = vsub.f32 %v53_v19, %v39_v16  ;;  %v520_v23 = vsub.f32 %v53_v19, %v40_v17 }
  0x80   :  { %v107_v30 = vmul.f32 %v514_v20, %v514_v20  ;;  %v108_v31 = vmul.f32 %v516_v21, %v516_v21  ;;  %v64_v32 = vmul.f32 %v518_v22, %v518_v22  ;;  %v65_v33 = vmul.f32 %v520_v23, %v520_v23 }
  0x81   :  { %v103_v24 = vpop.permute.xlu1 %102  ;;  %v60_v25 = vpop.permute.xlu0 %59 }
  0x82   :  { %v522_v26 = vmul.f32 %v103_v24, %v32_v14  ;;  %v524_v27 = vmul.f32 %v103_v24, %v36_v15  ;;  %v62_v28 = vmul.f32 %v60_v25, %v32_v14  ;;  %v63_v29 = vmul.f32 %v60_v25, %v36_v15 }
  0x84   :  { %v109_v34 = vmul.f32 %v522_v26, %v522_v26  ;;  %v110_v35 = vmul.f32 %v524_v27, %v524_v27  ;;  %v66_v36 = vmul.f32 %v62_v28, %v62_v28  ;;  %v67_v37 = vmul.f32 %v63_v29, %v63_v29 }
  0x86   :  { %v111_v38 = vadd.f32 %v109_v34, %v107_v30  ;;  %v112_v39 = vadd.f32 %v110_v35, %v108_v31  ;;  %v68_v40 = vadd.f32 %v66_v36, %v64_v32  ;;  %v69_v41 = vadd.f32 %v67_v37, %v65_v33  ;;  %v145_v42 = vpop.permute.xlu1 %144  ;;  %v139_v43 = vpop.permute.xlu0 %138 }
  0x87   :  { %v538_v44 = vmul.f32 %v145_v42, %v32_v14  ;;  %v540_v45 = vmul.f32 %v145_v42, %v36_v15  ;;  %v141_v46 = vsub.f32 %v139_v43, %v39_v16  ;;  %v142_v47 = vsub.f32 %v139_v43, %v40_v17 }
  0x88   :  { %372 = vrcp.f32 %v111_v38 }
  0x89   :  { %374 = vrcp.f32 %v112_v39  ;;  %v151_v48 = vmul.f32 %v538_v44, %v538_v44  ;;  %v152_v49 = vmul.f32 %v540_v45, %v540_v45  ;;  %v149_v50 = vmul.f32 %v141_v46, %v141_v46 }
  0x8a   :  { %376 = vrcp.f32 %v68_v40  ;;  %v150_v51 = vmul.f32 %v142_v47, %v142_v47 }
  0x8b   :  { %378 = vrcp.f32 %v69_v41  ;;  %v153_v52 = vadd.f32 %v151_v48, %v149_v50  ;;  %v181_v53 = vpop.permute.xlu1 %180  ;;  %v187_v54 = vpop.permute.xlu0 %186 }
  0x8c   :  { %v154_v55 = vadd.f32 %v152_v49, %v150_v51  ;;  %v546_v56 = vsub.f32 %v181_v53, %v39_v16  ;;  %v548_v57 = vsub.f32 %v181_v53, %v40_v17  ;;  %v550_v58 = vmul.f32 %v187_v54, %v32_v14 }
  0x8d   :  { %380 = vrcp.f32 %v153_v52  ;;  %v552_v59 = vmul.f32 %v187_v54, %v36_v15 }
  0x8e   :  { %382 = vrcp.f32 %v154_v55  ;;  %v191_v60 = vmul.f32 %v546_v56, %v546_v56  ;;  %v192_v61 = vmul.f32 %v548_v57, %v548_v57  ;;  %v193_v62 = vmul.f32 %v550_v58, %v550_v58 }
  0x8f   :  { %v194_v63 = vmul.f32 %v552_v59, %v552_v59 }
  0x90   :  { %v195_v0 = vadd.f32 %v193_v62, %v191_v60  ;;  %v81_v1 = vpop.permute.xlu1 %80  ;;  %v48_v49 = vpop.permute.xlu0 %47 }
  0x91   :  { %v196_v2 = vadd.f32 %v194_v63, %v192_v61  ;;  %v89_v16 = vmul.f32 %v81_v1, %v62_v28  ;;  %v90_v17 = vmul.f32 %v81_v1, %v63_v29  ;;  %v83_v30 = vmul.f32 %v81_v1, %v518_v22 }
  0x92   :  { %384 = vrcp.f32 %v195_v0  ;;  %v84_v31 = vmul.f32 %v81_v1, %v520_v23 }
  0x93   :  { %386 = vrcp.f32 %v196_v2 }
  0x95   :  { %v373_v3 = vpop.eup %372  ;;  %v123_v4 = vpop.permute.xlu1 %122 }
  0x96   :  { %v375_v5 = vpop.eup %374  ;;  %v115_v6 = vmul.f32 %v373_v3, %v111_v38  ;;  %v125_v35 = vmul.f32 %v123_v4, %v514_v20  ;;  %v126_v36 = vmul.f32 %v123_v4, %v516_v21  ;;  %v131_v38 = vmul.f32 %v123_v4, %v522_v26 }
  0x97   :  { %v377_v7 = vpop.eup %376  ;;  %v116_v8 = vmul.f32 %v375_v5, %v112_v39  ;;  %v132_v28 = vmul.f32 %v123_v4, %v524_v27 }
  0x98   :  { %v379_v11 = vpop.eup %378  ;;  %v117_v12 = vsub.f32 2.0, %v115_v6  ;;  %v72_v13 = vmul.f32 %v377_v7, %v68_v40 }
  0x99   :  { %v118_v14 = vsub.f32 2.0, %v116_v8  ;;  %v73_v15 = vmul.f32 %v379_v11, %v69_v41 }
  0x9a   :  { %v381_v18 = vpop.eup %380  ;;  %v119_v19 = vmul.f32 %v373_v3, %v117_v12  ;;  %v165_v24 = vpop.permute.xlu1 %164  ;;  %v74_v25 = vsub.f32 2.0, %v72_v13 }
  0x9b   :  { %v383_v32 = vpop.eup %382  ;;  %v157_v33 = vmul.f32 %v381_v18, %v153_v52  ;;  %v120_v34 = vmul.f32 %v375_v5, %v118_v14  ;;  %v167_v29 = vmul.f32 %v165_v24, %v141_v46  ;;  %v168_v40 = vmul.f32 %v165_v24, %v142_v47 }
  0x9c   :  { %v158_v37 = vmul.f32 %v383_v32, %v154_v55  ;;  %v75_v41 = vsub.f32 2.0, %v73_v15  ;;  %v76_v42 = vmul.f32 %v377_v7, %v74_v25  ;;  %v133_v43 = vmul.f32 %v131_v38, %v119_v19 }
  0x9d   :  { %v159_v39 = vsub.f32 2.0, %v157_v33  ;;  %v173_v23 = vmul.f32 %v165_v24, %v538_v44  ;;  %v174_v48 = vmul.f32 %v165_v24, %v540_v45  ;;  %v134_v50 = vmul.f32 %v132_v28, %v120_v34 }
  0x9e   :  { %v160_v22 = vsub.f32 2.0, %v158_v37  ;;  %v77_v51 = vmul.f32 %v379_v11, %v75_v41  ;;  %v85_v52 = vmul.f32 %v83_v30, %v76_v42  ;;  %v127_v54 = vmul.f32 %v125_v35, %v119_v19 }
  0x9f   :  { %v385_v20 = vpop.eup %384  ;;  %v161_v21 = vmul.f32 %v381_v18, %v159_v39  ;;  %v207_v26 = vpop.permute.xlu1 %206  ;;  %v128_v47 = vmul.f32 %v126_v36, %v120_v34  ;;  %v91_v62 = vmul.f32 %v89_v16, %v76_v42 }
  0xa0   :  { %v387_v53 = vpop.eup %386  ;;  %v199_v27 = vmul.f32 %v385_v20, %v195_v0  ;;  %v162_v46 = vmul.f32 %v383_v32, %v160_v22  ;;  %v86_v60 = vmul.f32 %v84_v31, %v77_v51  ;;  %v87_v61 = vadd.f32 %v85_v52, %v48_v49 }
  0xa1   :  { %v200_v55 = vmul.f32 %v387_v53, %v196_v2  ;;  %v175_v44 = vmul.f32 %v173_v23, %v161_v21  ;;  %v92_v1 = vmul.f32 %v90_v17, %v77_v51  ;;  %v209_v45 = vmul.f32 %v207_v26, %v546_v56 }
  0xa2   :  { %v201_v63 = vsub.f32 2.0, %v199_v27  ;;  %v88_v4 = vadd.f32 %v86_v60, %v48_v49  ;;  %v129_v5 = vadd.f32 %v127_v54, %v87_v61  ;;  %v169_v6 = vmul.f32 %v167_v29, %v161_v21 }
  0xa3   :  { %v202_v3 = vsub.f32 2.0, %v200_v55  ;;  %v176_v7 = vmul.f32 %v174_v48, %v162_v46  ;;  %v170_v8 = vmul.f32 %v168_v40, %v162_v46  ;;  %v210_v0 = vmul.f32 %v207_v26, %v548_v57 }
  0xa4   :  { %v203_v11 = vmul.f32 %v385_v20, %v201_v63  ;;  %v130_v12 = vadd.f32 %v128_v47, %v88_v4  ;;  %v135_v13 = vadd.f32 %v133_v43, %v91_v62  ;;  %v215_v14 = vmul.f32 %v207_v26, %v550_v58 }
  0xa5   :  { %v204_v2 = vmul.f32 %v387_v53, %v202_v3  ;;  %v136_v15 = vadd.f32 %v134_v50, %v92_v1  ;;  %v171_v16 = vadd.f32 %v169_v6, %v129_v5  ;;  %v216_v17 = vmul.f32 %v207_v26, %v552_v59 }
  0xa6   :  { %v211_v18 = vmul.f32 %v209_v45, %v203_v11  ;;  %v172_v56 = vadd.f32 %v170_v8, %v130_v12  ;;  %v177_v19 = vadd.f32 %v175_v44, %v135_v13  ;;  %v217_v25 = vmul.f32 %v215_v14, %v203_v11 }
  0xa7   :  { %v212_v24 = vmul.f32 %v210_v0, %v204_v2  ;;  %v178_v30 = vadd.f32 %v176_v7, %v136_v15  ;;  %v218_v32 = vmul.f32 %v216_v17, %v204_v2  ;;  %v287_v17 = vpop.permute.xlu0 %286 }
  0xa8   :  { %v213_v31 = vadd.f32 %v211_v18, %v171_v16  ;;  %v219_v34 = vadd.f32 %v217_v25, %v177_v19 }
  0xa9   :  { %v214_v33 = vadd.f32 %v212_v24, %v172_v56  ;;  %v220_v57 = vadd.f32 %v218_v32, %v178_v30 }
  0xaa   :  { %v221_v35 = vmul.f32 %v213_v31, %v213_v31  ;;  %v223_v37 = vmul.f32 %v219_v34, %v219_v34 }
  0xab   :  { %v222_v36 = vmul.f32 %v214_v33, %v214_v33  ;;  %v224_v38 = vmul.f32 %v220_v57, %v220_v57 }
  0xac   :  { %v225_v58 = vadd.f32 %v223_v37, %v221_v35 }
  0xad   :  { %v226_v28 = vadd.f32 %v224_v38, %v222_v36 }
  0xae   :  { %388 = vrsqrt.f32 %v225_v58  ;;  %vm229_vm0 = vcmp.eq.f32.partialorder %v225_v58, inf  ;;  %v232_v40 = vand.u32 2147483648, %v225_v58  ;;  %vm231_vm1 = vcmp.eq.f32.partialorder %v225_v58, 0.0 }
  0xaf   :  { %390 = vrsqrt.f32 %v226_v28  ;;  %vm236_vm2 = vcmp.eq.f32.partialorder %v226_v28, inf  ;;  %v239_v22 = vand.u32 2147483648, %v226_v28  ;;  %vm238_vm3 = vcmp.eq.f32.partialorder %v226_v28, 0.0 }
  0xbb   :  { %v389_v29 = vpop.eup %388 }
  0xbc   :  { %v391_v59 = vpop.eup %390  ;;  %v228_v39 = vmul.f32 %v389_v29, %v225_v58 }
  0xbd   :  { %v235_v41 = vmul.f32 %v391_v59, %v226_v28 }
  0xbe   :  { %v230_v42 = vsel %vm229_vm0, %v225_v58, %v228_v39 }
  0xbf   :  { %v233_v43 = vsel %vm231_vm1, %v232_v40, %v230_v42  ;;  %v237_v23 = vsel %vm236_vm2, %v226_v28, %v235_v41 }
  0xc0   :  { %v240_v48 = vsel %vm238_vm3, %v239_v22, %v237_v23  ;;  %v241_v49 = vadd.f32 %v233_v43, %v213_v31  ;;  %v261_v63 = vadd.f32 1.0, %v233_v43 }
  0xc1   :  { %v242_v20 = vadd.f32 %v240_v48, %v214_v33  ;;  %v262_v1 = vadd.f32 1.0, %v240_v48 }
  0xc2   :  { %v243_v50 = vmul.f32 0.5, %v241_v49 }
  0xc3   :  { %v244_v21 = vmul.f32 0.5, %v242_v20 }
  0xc4   :  { %v245_v51 = vmax.f32 %v243_v50, 0.0 }
  0xc5   :  { %v246_v52 = vmax.f32 %v244_v21, 0.0 }
  0xc6   :  { %392 = vrsqrt.f32 %v245_v51  ;;  %vm249_vm4 = vcmp.eq.f32.partialorder %v245_v51, inf  ;;  %v252_v46 = vand.u32 2147483648, %v245_v51  ;;  %vm251_vm5 = vcmp.eq.f32.partialorder %v245_v51, 0.0 }
  0xc7   :  { %394 = vrsqrt.f32 %v246_v52  ;;  %vm256_vm6 = vcmp.eq.f32.partialorder %v246_v52, inf  ;;  %v259_v55 = vand.u32 2147483648, %v246_v52  ;;  %vm258_vm7 = vcmp.eq.f32.partialorder %v246_v52, 0.0 }
  0xd3   :  { %v393_v26 = vpop.eup %392 }
  0xd4   :  { %v395_v53 = vpop.eup %394  ;;  %v248_v27 = vmul.f32 %v393_v26, %v245_v51 }
  0xd5   :  { %v255_v54 = vmul.f32 %v395_v53, %v246_v52 }
  0xd6   :  { %v250_v47 = vsel %vm249_vm4, %v245_v51, %v248_v27 }
  0xd7   :  { %v253_v60 = vsel %vm251_vm5, %v252_v46, %v250_v47  ;;  %v257_v61 = vsel %vm256_vm6, %v246_v52, %v255_v54 }
  0xd8   :  { %v260_v62 = vsel %vm258_vm7, %v259_v55, %v257_v61  ;;  %v263_v44 = vmul.f32 2.0, %v253_v60 }
  0xd9   :  { %v264_v45 = vmul.f32 2.0, %v260_v62 }
  0xda   :  { %v265_v3 = vadd.f32 %v263_v44, %v261_v63  ;;  %v275_v13 = vsub.f32 %v261_v63, %v263_v44 }
  0xdb   :  { %v266_v4 = vadd.f32 %v264_v45, %v262_v1  ;;  %v276_v14 = vsub.f32 %v262_v1, %v264_v45 }
  0xdc   :  { %396 = vrcp.f32 %v265_v3 }
  0xdd   :  { %398 = vrcp.f32 %v266_v4 }
  0xe9   :  { %v397_v5 = vpop.eup %396 }
  0xea   :  { %v399_v6 = vpop.eup %398  ;;  %v269_v7 = vmul.f32 %v397_v5, %v265_v3 }
  0xeb   :  { %v270_v8 = vmul.f32 %v399_v6, %v266_v4 }
  0xec   :  { %v271_v11 = vsub.f32 2.0, %v269_v7 }
  0xed   :  { %v272_v0 = vsub.f32 2.0, %v270_v8 }
  0xee   :  { %v273_v12 = vmul.f32 %v397_v5, %v271_v11 }
  0xef   :  { %v274_v2 = vmul.f32 %v399_v6, %v272_v0 }
  0xf0   :  { %v277_v15 = vmul.f32 %v275_v13, %v273_v12 }
  0xf1   :  { %v278_v16 = vmul.f32 %v276_v14, %v274_v2 }
  0xf2   :  { %v279_v18 = vsub.f32 1.0, %v277_v15 }
  0xf3   :  { %v280_v56 = vsub.f32 1.0, %v278_v16 }
  0xf4   :  { %v289_v19 = vmul.f32 %v287_v17, %v279_v18  ;;  %281 = vst [vmem:[#allocation2] sm:$0xff] %v279_v18 }
  0xf5   :  { %v290_v24 = vmul.f32 %v287_v17, %v280_v56  ;;  %282 = vst [vmem:[#allocation2 + $0x8] sm:$0xff] %v280_v56 }
  0xf6   :  { %v291_v25 = vrot.slane %v289_v19, 4 }
  0xf7   :  { %411 = shalt.err (!%p408_p4)
}
  0xf8   :  { %335 = dma.vmem_to_hbm [thread:$0]  %s333_s5, 256, %s588_s6, [#allocation3]   ;;  %v297_v30 = vrot.slane %v290_v24, 4  ;;  %v292_v31 = vadd.f32 %v291_v25, %v289_v19  ;;  %v449_v33 = vmov 1966171168   ;;  %vm323_vm8 = vcmp.lt.s32.totalorder %v29_v9, 256 }
  0xf9   :  { %v307_v34 = vunpack.c.l.s4 %v449_v33  ;;  %s450_s12 = smov [#allocation4]  }
  0xfa   :  { %v298_v32 = vadd.f32 %v297_v30, %v290_v24  ;;  %v293_v57 = vrot.slane %v292_v31, 2  ;;  %s342_s13 = sshll.u32 %s450_s12, 4  ;;  %s343_s13 = int_to_ptr.vmem [resolvable:$true] %s342_s13 }
  0xfb   :  { %v308_v38 = vunpack.c.0.s8 %v307_v34  ;;  %s420_s6 = scalar_lea.vmem %s343_s13, 32  ;;  %p425_p6 = scmp.lt.s32.totalorder %s343_s13, %s343_s13 }
  0xfc   :  { %v299_v35 = vrot.slane %v298_v32, 2  ;;  %v294_v36 = vadd.f32 %v293_v57, %v292_v31  ;;  %p421_p5 = scmp.ne.s32.totalorder %s343_s13, %s420_s6  ;;  %p426_p7 = scmp.lt.s32.totalorder %s420_s6, %s420_s6 }
  0xfd   :  { %v311_v39 = vsub.s32 %v308_v38, %v507_v10 }
  0xfe   :  { %v300_v37 = vadd.f32 %v299_v35, %v298_v32  ;;  %v295_v58 = vrot.slane %v294_v36, 1  ;;  %p427_p8 = por %p426_p7, %p425_p6 }
 0x100   :  { %v301_v28 = vrot.slane %v300_v37, 1  ;;  %v296_v29 = vadd.f32 %v295_v58, %v294_v36  ;;  %p428_p9 = pnand %p427_p8, %p421_p5 }
 0x102   :  { %v302_v59 = vadd.f32 %v301_v28, %v300_v37 }
 0x104   :  { %v305_v40 = vcombine.low %v296_v29, %v302_v59 }
 0x106   :  { %v312_v41 = vrot.slane %v305_v40, %v311_v39 }
 0x108   :  { %v319_v42 = vrot.slane %v312_v41, %v311_v39 }
 0x10a   :  { %325 = vst.msk [vmem:[#allocation4] sm:$0x3] %vm323_vm8, %v319_v42 }
 0x10b   :  { %431 = shalt.err (!%p428_p9)
}
 0x10c   :  { %345 = dma.vmem_to_hbm [thread:$0]  %s343_s13, 32, %s589_s7, [#allocation5]  }
 0x10d   :  { %440 = dma.done.wait [#allocation3], 256  }
 0x10e   :  { %441 = vsyncadd [#allocation3], 4294967040 }
 0x10f   :  { %442 = dma.done.wait [#allocation5], 32  }
 0x110   :  { %443 = vsyncadd [#allocation5], 4294967264 }
 0x111   :  { %352 = vsyncpa [#allocation3], 1 }
 0x112   :  { %353 = vsyncpa [#allocation5], 1 }

</bundles_post_ra>
